<compile_context>
chip_gen: v6e
topology: v6e:2x2x1
jax: 0.10.0
libtpu: 0.0.40
codegen_flags: <defaults>
</compile_context>

<pallas_src>
import functools

import jax
import jax.numpy as jnp
from jax import lax
from jax.experimental import pallas as pl
from jax.experimental.pallas import tpu as pltpu

_LANES = 128
_SUBLANES = 8
_CHUNK_ROWS = 512  # rows per inner-loop chunk (multiple of 8)


def _round_up(x, m):
    return -(-x // m) * m


def _pick_chunk(tile_rows):
    """Largest multiple of 8 that divides tile_rows and is <= _CHUNK_ROWS."""
    c = min(_CHUNK_ROWS, tile_rows)
    while c > _SUBLANES and tile_rows % c:
        c -= _SUBLANES
    return c


def _chip_defaults():
    """(cores to split the reduction over, per-input per-buffer tile bytes)."""
    try:
        kind = jax.devices()[0].device_kind.lower().replace(" ", "")
    except Exception:
        kind = ""
    if "v7" in kind or "7x" in kind:   # 2 TCs/chip, 32 MiB default scoped VMEM
        return 2, 4 << 20
    if "v6" in kind:                   # 1 TC/chip, 32 MiB default scoped VMEM
        return 1, 4 << 20
    # v5e / unknown: 1 TC, 16 MiB default scoped VMEM -> stay well inside it.
    return 1, 2 << 20


def _fold8(x, chunk):
    """(chunk, 128) f32 -> (8, 128) partial sums via sublane-group adds (VPU)."""
    return jnp.sum(x.reshape(chunk // _SUBLANES, _SUBLANES, _LANES), axis=0)


def _loss_kernel(o_ref, t_ref, num_ref, den_ref, *, rows, tile_rows, chunk):
    """Accumulate per-core partial sums of (t-o)^2 and t^2 into (8,128) slabs."""
    c = pl.program_id(0)          # core slice ("parallel")
    i = pl.program_id(1)          # sequential step within the slice ("arbitrary")
    steps = pl.num_programs(1)

    @pl.when(i == 0)
    def _init():
        num_ref[0] = jnp.zeros((_SUBLANES, _LANES), jnp.float32)
        den_ref[0] = jnp.zeros((_SUBLANES, _LANES), jnp.float32)

    # Global block index.  The index_map clamps the DMA for out-of-range steps
    # (redundant re-read of the last block); `g` here is UNclamped so those
    # steps see valid_rows == 0 and are fully masked -> contribute exactly 0.
    g = c * steps + i
    valid_rows = jnp.clip(rows - g * tile_rows, 0, tile_rows)
    n_chunks = tile_rows // chunk
    zero = jnp.zeros((_SUBLANES, _LANES), jnp.float32)

    @pl.when(valid_rows == tile_rows)
    def _full_block():            # hot path: no iota / where at all
        def body(k, carry):
            dd, tt = carry
            r = pl.multiple_of(k * chunk, chunk)
            o = o_ref[pl.ds(r, chunk), :].astype(jnp.float32)
            t = t_ref[pl.ds(r, chunk), :].astype(jnp.float32)
            d = t - o
            return dd + _fold8(d * d, chunk), tt + _fold8(t * t, chunk)

        dd, tt = lax.fori_loop(0, n_chunks, body, (zero, zero))
        num_ref[0] = num_ref[0] + dd
        den_ref[0] = den_ref[0] + tt

    @pl.when(valid_rows != tile_rows)
    def _ragged_block():          # cold path: at most one block per core
        row_id = lax.broadcasted_iota(jnp.int32, (chunk, _LANES), 0)

        def body(k, carry):
            dd, tt = carry
            r = pl.multiple_of(k * chunk, chunk)
            mask = (row_id + r) < valid_rows
            o = o_ref[pl.ds(r, chunk), :].astype(jnp.float32)
            t = jnp.where(mask, t_ref[pl.ds(r, chunk), :].astype(jnp.float32), 0.0)
            d = jnp.where(mask, t - o, 0.0)
            return dd + _fold8(d * d, chunk), tt + _fold8(t * t, chunk)

        dd, tt = lax.fori_loop(0, n_chunks, body, (zero, zero))
        num_ref[0] = num_ref[0] + dd
        den_ref[0] = den_ref[0] + tt


def relative_frobenius_loss(output, target, *, tile_m=None):
    """Pallas equivalent of torch.norm(t - o, 'fro')**2 / torch.norm(t, 'fro')**2."""
    assert output.shape == target.shape, "output/target must have the same shape"
    n = int(output.size)

    flat_o = output.reshape(-1)   # native dtype; f32 cast happens in-kernel
    flat_t = target.reshape(-1)

    # Pad only when n is not a multiple of 128 (zero padding adds 0 to both
    # sums).  Aligned shapes (the common NN case) are completely copy-free.
    # TODO(synk): for unaligned n, a memory_space=pl.ANY + manual
    # make_async_copy path would avoid the full-array copy XLA materializes
    # when feeding the padded operand into the pallas_call.
    pad = (-n) % _LANES
    if pad:
        flat_o = jnp.pad(flat_o, (0, pad))
        flat_t = jnp.pad(flat_t, (0, pad))
    rows = (n + pad) // _LANES

    itemsize = max(output.dtype.itemsize, target.dtype.itemsize)
    cores_chip, tile_bytes = _chip_defaults()

    if tile_m is None:
        tile_chip = max(_CHUNK_ROWS,
                        (tile_bytes // (_LANES * itemsize)) // _CHUNK_ROWS * _CHUNK_ROWS)
        if rows >= _CHUNK_ROWS:
            tile_rows = min(tile_chip, _round_up(rows, _CHUNK_ROWS))
        else:
            tile_rows = _round_up(rows, _SUBLANES)
    else:
        assert tile_m % _SUBLANES == 0, "tile_m must be a multiple of 8"
        tile_rows = min(tile_m, _round_up(rows, _SUBLANES))
    chunk = _pick_chunk(tile_rows)

    total_blocks = -(-rows // tile_rows)
    num_cores = min(cores_chip, total_blocks)   # 2-way split only where it helps
    steps = -(-total_blocks // num_cores)

    def in_map(c, i):
        # Clamp so out-of-range steps re-read the last block (masked to zero).
        g = jnp.minimum(c * steps + i, total_blocks - 1)
        return (g, 0)

    o2 = flat_o.reshape(rows, _LANES)
    t2 = flat_t.reshape(rows, _LANES)

    out_slab = jax.ShapeDtypeStruct((num_cores, _SUBLANES, _LANES), jnp.float32)
    out_bytes = 2 * num_cores * _SUBLANES * _LANES * 4

    num_out, den_out = pl.pallas_call(
        functools.partial(_loss_kernel, rows=rows, tile_rows=tile_rows, chunk=chunk),
        out_shape=(out_slab, out_slab),
        grid_spec=pltpu.PrefetchScalarGridSpec(
            num_scalar_prefetch=0,
            grid=(num_cores, steps),
            in_specs=[
                pl.BlockSpec((tile_rows, _LANES), in_map),
                pl.BlockSpec((tile_rows, _LANES), in_map),
            ],
            out_specs=(
                pl.BlockSpec((1, _SUBLANES, _LANES), lambda c, i: (c, 0, 0)),
                pl.BlockSpec((1, _SUBLANES, _LANES), lambda c, i: (c, 0, 0)),
            ),
        ),
        compiler_params=pltpu.CompilerParams(
            dimension_semantics=("parallel", "arbitrary"),
        ),
        cost_estimate=pl.CostEstimate(
            flops=3 * n,
            transcendentals=0,
            bytes_accessed=n * (output.dtype.itemsize + target.dtype.itemsize)
                           + out_bytes,
        ),
    )(o2, t2)

    # Single final cross-lane reduce + division, done once outside the kernel.
    return jnp.sum(num_out) / jnp.sum(den_out)


def _check(shape, key, **kw):
    k_o, k_t = jax.random.split(key)
    o = jax.random.normal(k_o, shape, dtype=jnp.float32)
    t = jax.random.normal(k_t, shape, dtype=jnp.float32)
    loss = relative_frobenius_loss(o, t, **kw)
    jax.block_until_ready(loss)
    ref = jnp.sum((t - o) ** 2) / jnp.sum(t ** 2)
    assert jnp.allclose(loss, ref, rtol=1e-5, atol=1e-6), (shape, loss, ref)
    return loss


if __name__ == "__main__":
    key = jax.random.PRNGKey(0)
    k0, k1, k2 = jax.random.split(key, 3)

    # Primary example: small NCHW tensor consistent with the module's usage.
    _check((2, 4, 16, 16), k0)          # aligned, single full block (fast path)

    # Extra coverage of the other kernel paths (kept small):
    _check((3, 5, 37), k1)              # unaligned n -> padded + masked cold path
    _check((8, 16, 16, 40), k2)         # multi-chunk fori_loop fast path

    print("KERNEL_OK")
</pallas_src>

<mosaic_0001>
module attributes {stable_mosaic.version = 11 : i64} {
  func.func @_loss_kernel(%arg0: i32, %arg1: i32, %arg2: memref<16x128xf32, #tpu.memory_space<vmem>>, %arg3: memref<16x128xf32, #tpu.memory_space<vmem>>, %arg4: memref<1x8x128xf32, #tpu.memory_space<vmem>>, %arg5: memref<1x8x128xf32, #tpu.memory_space<vmem>>) attributes {dimension_semantics = [#tpu.dimension_semantics<parallel>, #tpu.dimension_semantics<arbitrary>], iteration_bounds = array<i64: 1, 1>, scalar_prefetch = 0 : i64, scratch_operands = 0 : i64, tpu.core_type = #tpu.core_type<tc>, window_params = [{transform_indices = @transform_0, window_bounds = array<i64: 16, 128>}, {transform_indices = @transform_1, window_bounds = array<i64: 16, 128>}, {transform_indices = @transform_2, window_bounds = array<i64: 1, 8, 128>}, {transform_indices = @transform_3, window_bounds = array<i64: 1, 8, 128>}]} {
    %c0_i32 = arith.constant 0 : i32
    %0 = arith.cmpi eq, %arg1, %c0_i32 : i32
    %1 = arith.extui %0 : i1 to i32
    %c0_i32_0 = arith.constant 0 : i32
    %2 = arith.cmpi ne, %1, %c0_i32_0 : i32
    scf.if %2 {
      %cst_8 = arith.constant 0.000000e+00 : f32
      %16 = vector.broadcast %cst_8 : f32 to vector<8x128xf32>
      %c0 = arith.constant 0 : index
      %c0_9 = arith.constant 0 : index
      %c0_10 = arith.constant 0 : index
      %17 = vector.load %arg4[%c0, %c0_9, %c0_10] : memref<1x8x128xf32, #tpu.memory_space<vmem>>, vector<1x8x128xf32>
      %18 = vector.shape_cast %17 : vector<1x8x128xf32> to vector<8x128xf32>
      %19 = vector.shape_cast %16 : vector<8x128xf32> to vector<1x8x128xf32>
      tpu.vector_store %arg4[%c0, %c0_9, %c0_10], %19 {strides = array<i32>} : memref<1x8x128xf32, #tpu.memory_space<vmem>>, vector<1x8x128xf32>,
      %cst_11 = arith.constant 0.000000e+00 : f32
      %20 = vector.broadcast %cst_11 : f32 to vector<8x128xf32>
      %c0_12 = arith.constant 0 : index
      %c0_13 = arith.constant 0 : index
      %c0_14 = arith.constant 0 : index
      %21 = vector.load %arg5[%c0_12, %c0_13, %c0_14] : memref<1x8x128xf32, #tpu.memory_space<vmem>>, vector<1x8x128xf32>
      %22 = vector.shape_cast %21 : vector<1x8x128xf32> to vector<8x128xf32>
      %23 = vector.shape_cast %20 : vector<8x128xf32> to vector<1x8x128xf32>
      tpu.vector_store %arg5[%c0_12, %c0_13, %c0_14], %23 {strides = array<i32>} : memref<1x8x128xf32, #tpu.memory_space<vmem>>, vector<1x8x128xf32>,
    } else {
    }
    %c1_i32 = arith.constant 1 : i32
    %3 = arith.muli %arg0, %c1_i32 : i32
    %4 = arith.addi %3, %arg1 : i32
    %c16_i32 = arith.constant 16 : i32
    %5 = arith.muli %4, %c16_i32 : i32
    %c16_i32_1 = arith.constant 16 : i32
    %6 = arith.subi %c16_i32_1, %5 : i32
    %c0_i32_2 = arith.constant 0 : i32
    %c16_i32_3 = arith.constant 16 : i32
    %7 = arith.maxsi %c0_i32_2, %6 : i32
    %8 = arith.minsi %c16_i32_3, %7 : i32
    %cst = arith.constant 0.000000e+00 : f32
    %9 = vector.broadcast %cst : f32 to vector<8x128xf32>
    %c16_i32_4 = arith.constant 16 : i32
    %10 = arith.cmpi eq, %8, %c16_i32_4 : i32
    %11 = arith.extui %10 : i1 to i32
    %c0_i32_5 = arith.constant 0 : i32
    %12 = arith.cmpi ne, %11, %c0_i32_5 : i32
    scf.if %12 {
      %c0_i32_8 = arith.constant 0 : i32
      %c16_i32_9 = arith.constant 16 : i32
      %16 = arith.muli %c0_i32_8, %c16_i32_9 : i32
      %17 = tpu.assume_multiple %16, 16 : i32
      %18 = arith.index_cast %17 : i32 to index
      %c0 = arith.constant 0 : index
      %19 = vector.load %arg2[%18, %c0] : memref<16x128xf32, #tpu.memory_space<vmem>>, vector<16x128xf32>
      %20 = arith.index_cast %17 : i32 to index
      %c0_10 = arith.constant 0 : index
      %21 = vector.load %arg3[%20, %c0_10] : memref<16x128xf32, #tpu.memory_space<vmem>>, vector<16x128xf32>
      %22 = arith.subf %21, %19 : vector<16x128xf32>
      %23 = arith.mulf %22, %22 : vector<16x128xf32>
      %24 = vector.shape_cast %23 : vector<16x128xf32> to vector<2x8x128xf32>
      %cst_11 = arith.constant dense<0.000000e+00> : vector<8x128xf32>
      %25 = vector.multi_reduction <add>, %24, %cst_11 [0] : vector<2x8x128xf32> to vector<8x128xf32>
      %26 = arith.addf %9, %25 : vector<8x128xf32>
      %27 = arith.mulf %21, %21 : vector<16x128xf32>
      %28 = vector.shape_cast %27 : vector<16x128xf32> to vector<2x8x128xf32>
      %cst_12 = arith.constant dense<0.000000e+00> : vector<8x128xf32>
      %29 = vector.multi_reduction <add>, %28, %cst_12 [0] : vector<2x8x128xf32> to vector<8x128xf32>
      %30 = arith.addf %9, %29 : vector<8x128xf32>
      %c1_i32_13 = arith.constant 1 : i32
      %c0_14 = arith.constant 0 : index
      %c0_15 = arith.constant 0 : index
      %c0_16 = arith.constant 0 : index
      %31 = vector.load %arg4[%c0_14, %c0_15, %c0_16] : memref<1x8x128xf32, #tpu.memory_space<vmem>>, vector<1x8x128xf32>
      %32 = vector.shape_cast %31 : vector<1x8x128xf32> to vector<8x128xf32>
      %33 = arith.addf %32, %26 : vector<8x128xf32>
      %c0_17 = arith.constant 0 : index
      %c0_18 = arith.constant 0 : index
      %c0_19 = arith.constant 0 : index
      %34 = vector.load %arg4[%c0_17, %c0_18, %c0_19] : memref<1x8x128xf32, #tpu.memory_space<vmem>>, vector<1x8x128xf32>
      %35 = vector.shape_cast %34 : vector<1x8x128xf32> to vector<8x128xf32>
      %36 = vector.shape_cast %33 : vector<8x128xf32> to vector<1x8x128xf32>
      tpu.vector_store %arg4[%c0_17, %c0_18, %c0_19], %36 {strides = array<i32>} : memref<1x8x128xf32, #tpu.memory_space<vmem>>, vector<1x8x128xf32>,
      %c0_20 = arith.constant 0 : index
      %c0_21 = arith.constant 0 : index
      %c0_22 = arith.constant 0 : index
      %37 = vector.load %arg5[%c0_20, %c0_21, %c0_22] : memref<1x8x128xf32, #tpu.memory_space<vmem>>, vector<1x8x128xf32>
      %38 = vector.shape_cast %37 : vector<1x8x128xf32> to vector<8x128xf32>
      %39 = arith.addf %38, %30 : vector<8x128xf32>
      %c0_23 = arith.constant 0 : index
      %c0_24 = arith.constant 0 : index
      %c0_25 = arith.constant 0 : index
      %40 = vector.load %arg5[%c0_23, %c0_24, %c0_25] : memref<1x8x128xf32, #tpu.memory_space<vmem>>, vector<1x8x128xf32>
      %41 = vector.shape_cast %40 : vector<1x8x128xf32> to vector<8x128xf32>
      %42 = vector.shape_cast %39 : vector<8x128xf32> to vector<1x8x128xf32>
      tpu.vector_store %arg5[%c0_23, %c0_24, %c0_25], %42 {strides = array<i32>} : memref<1x8x128xf32, #tpu.memory_space<vmem>>, vector<1x8x128xf32>,
    } else {
    }
    %c16_i32_6 = arith.constant 16 : i32
    %13 = arith.cmpi ne, %8, %c16_i32_6 : i32
    %14 = arith.extui %13 : i1 to i32
    %c0_i32_7 = arith.constant 0 : i32
    %15 = arith.cmpi ne, %14, %c0_i32_7 : i32
    scf.if %15 {
      %16 = tpu.iota {dimensions = array<i32: 0>} : vector<16x128xi32>
      %c0_i32_8 = arith.constant 0 : i32
      %c16_i32_9 = arith.constant 16 : i32
      %17 = arith.muli %c0_i32_8, %c16_i32_9 : i32
      %18 = tpu.assume_multiple %17, 16 : i32
      %19 = vector.broadcast %18 : i32 to vector<16x128xi32>
      %20 = arith.addi %16, %19 : vector<16x128xi32>
      %21 = vector.broadcast %8 : i32 to vector<16x128xi32>
      %22 = arith.cmpi slt, %20, %21 : vector<16x128xi32>
      %23 = arith.index_cast %18 : i32 to index
      %c0 = arith.constant 0 : index
      %24 = vector.load %arg2[%23, %c0] : memref<16x128xf32, #tpu.memory_space<vmem>>, vector<16x128xf32>
      %25 = arith.index_cast %18 : i32 to index
      %c0_10 = arith.constant 0 : index
      %26 = vector.load %arg3[%25, %c0_10] : memref<16x128xf32, #tpu.memory_space<vmem>>, vector<16x128xf32>
      %cst_11 = arith.constant 0.000000e+00 : f32
      %27 = vector.broadcast %cst_11 : f32 to vector<16x128xf32>
      %28 = arith.select %22, %26, %27 : vector<16x128xi1>, vector<16x128xf32>
      %29 = arith.subf %28, %24 : vector<16x128xf32>
      %cst_12 = arith.constant 0.000000e+00 : f32
      %30 = vector.broadcast %cst_12 : f32 to vector<16x128xf32>
      %31 = arith.select %22, %29, %30 : vector<16x128xi1>, vector<16x128xf32>
      %32 = arith.mulf %31, %31 : vector<16x128xf32>
      %33 = vector.shape_cast %32 : vector<16x128xf32> to vector<2x8x128xf32>
      %cst_13 = arith.constant dense<0.000000e+00> : vector<8x128xf32>
      %34 = vector.multi_reduction <add>, %33, %cst_13 [0] : vector<2x8x128xf32> to vector<8x128xf32>
      %35 = arith.addf %9, %34 : vector<8x128xf32>
      %36 = arith.mulf %28, %28 : vector<16x128xf32>
      %37 = vector.shape_cast %36 : vector<16x128xf32> to vector<2x8x128xf32>
      %cst_14 = arith.constant dense<0.000000e+00> : vector<8x128xf32>
      %38 = vector.multi_reduction <add>, %37, %cst_14 [0] : vector<2x8x128xf32> to vector<8x128xf32>
      %39 = arith.addf %9, %38 : vector<8x128xf32>
      %c1_i32_15 = arith.constant 1 : i32
      %c0_16 = arith.constant 0 : index
      %c0_17 = arith.constant 0 : index
      %c0_18 = arith.constant 0 : index
      %40 = vector.load %arg4[%c0_16, %c0_17, %c0_18] : memref<1x8x128xf32, #tpu.memory_space<vmem>>, vector<1x8x128xf32>
      %41 = vector.shape_cast %40 : vector<1x8x128xf32> to vector<8x128xf32>
      %42 = arith.addf %41, %35 : vector<8x128xf32>
      %c0_19 = arith.constant 0 : index
      %c0_20 = arith.constant 0 : index
      %c0_21 = arith.constant 0 : index
      %43 = vector.load %arg4[%c0_19, %c0_20, %c0_21] : memref<1x8x128xf32, #tpu.memory_space<vmem>>, vector<1x8x128xf32>
      %44 = vector.shape_cast %43 : vector<1x8x128xf32> to vector<8x128xf32>
      %45 = vector.shape_cast %42 : vector<8x128xf32> to vector<1x8x128xf32>
      tpu.vector_store %arg4[%c0_19, %c0_20, %c0_21], %45 {strides = array<i32>} : memref<1x8x128xf32, #tpu.memory_space<vmem>>, vector<1x8x128xf32>,
      %c0_22 = arith.constant 0 : index
      %c0_23 = arith.constant 0 : index
      %c0_24 = arith.constant 0 : index
      %46 = vector.load %arg5[%c0_22, %c0_23, %c0_24] : memref<1x8x128xf32, #tpu.memory_space<vmem>>, vector<1x8x128xf32>
      %47 = vector.shape_cast %46 : vector<1x8x128xf32> to vector<8x128xf32>
      %48 = arith.addf %47, %39 : vector<8x128xf32>
      %c0_25 = arith.constant 0 : index
      %c0_26 = arith.constant 0 : index
      %c0_27 = arith.constant 0 : index
      %49 = vector.load %arg5[%c0_25, %c0_26, %c0_27] : memref<1x8x128xf32, #tpu.memory_space<vmem>>, vector<1x8x128xf32>
      %50 = vector.shape_cast %49 : vector<1x8x128xf32> to vector<8x128xf32>
      %51 = vector.shape_cast %48 : vector<8x128xf32> to vector<1x8x128xf32>
      tpu.vector_store %arg5[%c0_25, %c0_26, %c0_27], %51 {strides = array<i32>} : memref<1x8x128xf32, #tpu.memory_space<vmem>>, vector<1x8x128xf32>,
    } else {
    }
    return
  }
  func.func @transform_0(%arg0: i32, %arg1: i32) -> (i32, i32) {
    %c1_i32 = arith.constant 1 : i32
    %0 = arith.muli %arg0, %c1_i32 : i32
    %1 = arith.addi %0, %arg1 : i32
    %c0_i32 = arith.constant 0 : i32
    %2 = arith.minsi %1, %c0_i32 : i32
    %c0_i32_0 = arith.constant 0 : i32
    %c0_i32_1 = arith.constant 0 : i32
    return %2, %c0_i32_0 : i32, i32
  }
  func.func @transform_1(%arg0: i32, %arg1: i32) -> (i32, i32) {
    %c1_i32 = arith.constant 1 : i32
    %0 = arith.muli %arg0, %c1_i32 : i32
    %1 = arith.addi %0, %arg1 : i32
    %c0_i32 = arith.constant 0 : i32
    %2 = arith.minsi %1, %c0_i32 : i32
    %c0_i32_0 = arith.constant 0 : i32
    %c0_i32_1 = arith.constant 0 : i32
    return %2, %c0_i32_0 : i32, i32
  }
  func.func @transform_2(%arg0: i32, %arg1: i32) -> (i32, i32, i32) {
    %c0_i32 = arith.constant 0 : i32
    %c0_i32_0 = arith.constant 0 : i32
    %c0_i32_1 = arith.constant 0 : i32
    return %arg0, %c0_i32, %c0_i32_0 : i32, i32, i32
  }
  func.func @transform_3(%arg0: i32, %arg1: i32) -> (i32, i32, i32) {
    %c0_i32 = arith.constant 0 : i32
    %c0_i32_0 = arith.constant 0 : i32
    %c0_i32_1 = arith.constant 0 : i32
    return %arg0, %c0_i32, %c0_i32_0 : i32, i32, i32
  }
}

</mosaic_0001>

<bundles_post_ra>
// kernel: tpu_custom_call.1
= control target key start
LH: loop header
LB: loop body
LE: loop exit
PB: predicated region body
PF: predicated region fallthrough
CT: control target
= control target key end

     0   :  { %9 = vsyncpa [#allocation3], 0  ;;  %s304_s0 = inlined_call_operand.hbm [shape: f32[16,128], index: 0, kind: input, shape index: {}]   ;;  %s305_s1 = inlined_call_operand.hbm [shape: f32[16,128], index: 1, kind: input, shape index: {}]   ;;  %s306_s2 = inlined_call_operand.hbm [shape: f32[1,8,128], index: 2, kind: output, shape index: {0}]   ;;  %s307_s3 = inlined_call_operand.hbm [shape: f32[1,8,128], index: 3, kind: output, shape index: {1}]  }
   0x1   :  { %10 = vsyncpa [#allocation6], 0 }
   0x2   :  { %11 = vsyncpa [#allocation4], 0 }
   0x3   :  { %12 = vsyncpa [#allocation9], 0  ;;  %s266_s12 = smov [#allocation2]  }
   0x4   :  { %s24_s13 = sshll.u32 %s266_s12, 4  ;;  %s25_s13 = int_to_ptr.vmem [resolvable:$true] %s24_s13 }
   0x5   :  { %s186_s14 = scalar_lea.vmem %s25_s13, 256  ;;  %p191_p1 = scmp.lt.s32.totalorder %s25_s13, %s25_s13 }
   0x6   :  { %p187_p0 = scmp.ne.s32.totalorder %s25_s13, %s186_s14  ;;  %p192_p2 = scmp.lt.s32.totalorder %s186_s14, %s186_s14 }
   0x8   :  { %p193_p3 = por %p192_p2, %p191_p1 }
   0xa   :  { %p194_p4 = pnand %p193_p3, %p187_p0 }
   0xc   :  { %197 = shalt.err (!%p194_p4)
}
   0xd   :  { %s267_s15 = smov 128   ;;  %s268_s16 = smov 8  }
   0xe   :  { %30 = dma.hbm_to_vmem [thread:$0]  %s304_s0, 256, %s25_s13, [#allocation3], %s267_s15, %s267_s15, %s268_s16  }
   0xf   :  { %s269_s19 = smov [#allocation5]  }
  0x10   :  { %s42_s20 = sshll.u32 %s269_s19, 4  ;;  %s43_s20 = int_to_ptr.vmem [resolvable:$true] %s42_s20 }
  0x11   :  { %s206_s21 = scalar_lea.vmem %s43_s20, 256  ;;  %p211_p6 = scmp.lt.s32.totalorder %s43_s20, %s43_s20 }
  0x12   :  { %p207_p5 = scmp.ne.s32.totalorder %s43_s20, %s206_s21  ;;  %p212_p7 = scmp.lt.s32.totalorder %s206_s21, %s206_s21 }
  0x14   :  { %p213_p8 = por %p212_p7, %p211_p6 }
  0x16   :  { %p214_p9 = pnand %p213_p8, %p207_p5 }
  0x18   :  { %217 = shalt.err (!%p214_p9)
}
  0x19   :  { %48 = dma.hbm_to_vmem [thread:$0]  %s305_s1, 256, %s43_s20, [#allocation6], %s267_s15, %s267_s15, %s268_s16  }
  0x1a   :  { %258 = dma.done.wait [#allocation3], 256  }
  0x1b   :  { %259 = vsyncadd [#allocation3], 4294967040 }
  0x1c   :  { %260 = dma.done.wait [#allocation6], 256  }
  0x1d   :  { %261 = vsyncadd [#allocation6], 4294967040  ;;  %v80_v0 = vld [vmem:[#allocation2] sm:$0xff]  ;;  %v81_v1 = vld [vmem:[#allocation2 + $0x8] sm:$0xff]  ;;  %s270_s0 = smov [#allocation8]   ;;  %s271_s25 = smov [#allocation7]  }
  0x1e   :  { %v82_v2 = vld [vmem:[#allocation5] sm:$0xff]  ;;  %v83_v3 = vld [vmem:[#allocation5 + $0x8] sm:$0xff]  ;;  %s153_s24 = sshll.u32 %s270_s0, 4  ;;  %s143_s26 = sshll.u32 %s271_s25, 4  ;;  %s154_s24 = int_to_ptr.vmem [resolvable:$true] %s153_s24  ;;  %s144_s26 = int_to_ptr.vmem [resolvable:$true] %s143_s26 }
  0x1f   :  { %v84_v4 = vsub.f32 %v82_v2, %v80_v0  ;;  %v90_v5 = vmul.f32 %v82_v2, %v82_v2  ;;  %v85_v6 = vsub.f32 %v83_v3, %v81_v1  ;;  %v91_v7 = vmul.f32 %v83_v3, %v83_v3  ;;  %s218_s1 = scalar_lea.vmem %s154_s24, 128  ;;  %p223_p11 = scmp.lt.s32.totalorder %s154_s24, %s154_s24 }
  0x20   :  { %p219_p10 = scmp.ne.s32.totalorder %s154_s24, %s218_s1  ;;  %p224_p12 = scmp.lt.s32.totalorder %s218_s1, %s218_s1 }
  0x21   :  { %v86_v8 = vmul.f32 %v84_v4, %v84_v4  ;;  %v87_v9 = vmul.f32 %v85_v6, %v85_v6  ;;  %v92_v10 = vadd.f32 %v91_v7, %v90_v5 }
  0x22   :  { %p225_p13 = por %p224_p12, %p223_p11 }
  0x23   :  { %v88_v11 = vadd.f32 %v87_v9, %v86_v8  ;;  %99 = vst [vmem:[#allocation8] sm:$0xff] %v92_v10 }
  0x24   :  { %p226_p0 = pnand %p225_p13, %p219_p10 }
  0x26   :  { %229 = shalt.err (!%p226_p0)
}
  0x27   :  { %156 = dma.vmem_to_hbm [thread:$0]  %s154_s24, 128, %s307_s3, [#allocation9]   ;;  %96 = vst [vmem:[#allocation7] sm:$0xff] %v88_v11 }
  0x28   :  { %s238_s29 = scalar_lea.vmem %s144_s26, 128  ;;  %p243_p2 = scmp.lt.s32.totalorder %s144_s26, %s144_s26 }
  0x29   :  { %p239_p1 = scmp.ne.s32.totalorder %s144_s26, %s238_s29  ;;  %p244_p3 = scmp.lt.s32.totalorder %s238_s29, %s238_s29 }
  0x2b   :  { %p245_p4 = por %p244_p3, %p243_p2 }
  0x2d   :  { %p246_p5 = pnand %p245_p4, %p239_p1 }
  0x2f   :  { %249 = shalt.err (!%p246_p5)
}
  0x30   :  { %146 = dma.vmem_to_hbm [thread:$0]  %s144_s26, 128, %s306_s2, [#allocation4]  }
  0x31   :  { %262 = dma.done.wait [#allocation4], 128  }
  0x32   :  { %263 = vsyncadd [#allocation4], 4294967168 }
  0x33   :  { %264 = dma.done.wait [#allocation9], 128  }
  0x34   :  { %265 = vsyncadd [#allocation9], 4294967168 }
  0x35   :  { %163 = vsyncpa [#allocation3], 1 }
  0x36   :  { %164 = vsyncpa [#allocation6], 1 }
  0x37   :  { %165 = vsyncpa [#allocation4], 1 }
  0x38   :  { %166 = vsyncpa [#allocation9], 1 }

</bundles_post_ra>
